<compile_context>
chip_gen: v7x
topology: tpu7x:2x2x1
jax: 0.10.0
libtpu: 0.0.40
codegen_flags: <defaults>
</compile_context>

<pallas_src>
import numpy as np
import jax
import jax.numpy as jnp
from jax import lax
from jax.experimental import pallas as pl
from jax.experimental.pallas import tpu as pltpu

H = 50            # real hidden size (nn.LSTM(hidden_size=50))
HP = 64           # lane-padded hidden size (H <= 64; gates pack 2-per-vreg)
IN_SIZE = 1       # input_size=1
OUT_LANES = 128   # lane-dense output width (wrapper slices column 0)

GATE_SCALE = np.array([0.5, 0.5, 1.0, 0.5], np.float32)   # i, f, g, o


def lstm_kernel(xt_ref, wih_ref, b_ref, whh_ref, wout_ref, bout_ref,
                out_ref, pre_ref):
    """xt_ref:   (T, Bp, 1)     raw inputs, time-major, batch padded to Bp
       wih_ref:  (1, 4*HP)      input->gate row, i/f/o columns pre-scaled by 0.5
       b_ref:    (1, 4*HP)      b_ih + b_hh,     i/f/o columns pre-scaled by 0.5
       whh_ref:  (HP, 4*HP)     hidden->gate,    i/f/o columns pre-scaled by 0.5
       wout_ref: (1, HP)        Linear(50, 1) weight row (lane padded)
       bout_ref: (1, 1)         Linear bias
       out_ref:  (Bp, OUT_LANES) result broadcast across lanes (unmasked store)
       pre_ref:  (T, Bp, 4*HP)  VMEM scratch: x_t*W_ih + b for all t."""
    T, Bp, _ = pre_ref.shape
    Hp = whh_ref.shape[0]

    # Prologue: input projection + bias for all time steps in one vectorized
    # FMA (fully parallel over T, off the serial recurrence chain). Padded
    # gate lanes stay exactly 0 because wih/b are 0 there.
    pre_ref[...] = xt_ref[...] * wih_ref[...] + b_ref[...]

    # Hoist the loop-invariant weight loads out of the recurrence.
    whh = whh_ref[...]
    wout = wout_ref[...]

    def step(t, carry):
        h, c = carry
        gates = pre_ref[t] + jnp.dot(h, whh,
                                     preferred_element_type=jnp.float32)  # (Bp, 4*Hp)
        # Single fused EUP pass over all four gates; i/f/o preactivations were
        # pre-scaled by 0.5 so sigmoid(z) = 0.5*tanh(z/2) + 0.5 is recovered
        # with one scalar FMA per slice (exact identity).
        act = jnp.tanh(gates)
        i_g = act[:, 0 * Hp:1 * Hp] * 0.5 + 0.5
        f_g = act[:, 1 * Hp:2 * Hp] * 0.5 + 0.5
        g_g = act[:, 2 * Hp:3 * Hp]
        o_g = act[:, 3 * Hp:4 * Hp] * 0.5 + 0.5
        c_new = f_g * c + i_g * g_g
        h_new = o_g * jnp.tanh(c_new)
        return (h_new, c_new)

    # h/c must start at exactly 0 so the zero-padded hidden lanes stay 0
    # through the recurrence (preact 0 -> tanh 0 -> g=0 -> c stays 0 -> h 0).
    h0 = jnp.zeros((Bp, Hp), jnp.float32)
    c0 = jnp.zeros((Bp, Hp), jnp.float32)
    h_last, _ = lax.fori_loop(0, T, step, (h0, c0), unroll=True)

    # Final Linear(50, 1): VPU multiply + lane (XLU) reduction; broadcast the
    # (Bp, 1) result across 128 lanes so the store is a full, unmasked vst.
    y = jnp.sum(h_last * wout, axis=-1, keepdims=True) + bout_ref[...]
    out_ref[...] = jnp.broadcast_to(y, (Bp, OUT_LANES))


def pack_params(w_ih, w_hh, b_ih, b_hh, w_lin, b_lin):
    """Pack PyTorch-layout LSTM/Linear params into the lane-padded kernel
    layout. i/f/o gate columns are pre-scaled by 0.5 so the kernel can fuse
    all four gate nonlinearities into a single tanh pass."""
    wih_row = np.zeros((1, 4 * HP), np.float32)
    b_row = np.zeros((1, 4 * HP), np.float32)
    whh_p = np.zeros((HP, 4 * HP), np.float32)
    b_sum = np.asarray(b_ih) + np.asarray(b_hh)
    for k in range(4):                                   # PyTorch gate order: i, f, g, o
        s = GATE_SCALE[k]
        wih_row[0, k * HP:k * HP + H] = s * np.asarray(w_ih)[k * H:(k + 1) * H, 0]
        whh_p[:H, k * HP:k * HP + H] = s * np.asarray(w_hh)[k * H:(k + 1) * H, :].T
        b_row[0, k * HP:k * HP + H] = s * b_sum[k * H:(k + 1) * H]
    wout_row = np.zeros((1, HP), np.float32)
    wout_row[0, :H] = np.asarray(w_lin)[0, :]
    bout_p = np.asarray(b_lin, np.float32).reshape(1, 1)
    return (jnp.asarray(wih_row), jnp.asarray(b_row), jnp.asarray(whh_p),
            jnp.asarray(wout_row), jnp.asarray(bout_p))


def predicting_model_forward(x, packed):
    """x: (B, T, 1) float32 -> (B, 1) float32 (same semantics as the nn.Module)."""
    wih_row, b_row, whh_p, wout_row, bout_p = packed
    B, T, _ = x.shape
    # Pad batch to a sublane multiple. Co-batching requests toward Bp ~ 128
    # (v5e) / 256 (v6e/v7x) fills more MXU rows at near-zero extra per-step
    # latency when the serving path allows it.
    Bp = max(8, ((B + 7) // 8) * 8)

    # Time-major, batch-padded raw input; the input projection itself happens
    # inside the kernel prologue so the (T, Bp, 4*HP) pre-gate tensor never
    # touches HBM.
    xt = jnp.swapaxes(x, 0, 1)                                    # (T, B, 1)
    xt_p = jnp.zeros((T, Bp, 1), jnp.float32).at[:, :B, :].set(xt)

    vmem = pl.BlockSpec(memory_space=pltpu.MemorySpace.VMEM)
    out = pl.pallas_call(
        lstm_kernel,
        out_shape=jax.ShapeDtypeStruct((Bp, OUT_LANES), jnp.float32),
        in_specs=[vmem] * 6,
        out_specs=vmem,
        scratch_shapes=[pltpu.VMEM((T, Bp, 4 * HP), jnp.float32)],
    )(xt_p, wih_row, b_row, whh_p, wout_row, bout_p)
    return out[:B, :1]


def reference_forward(x, w_ih, w_hh, b_ih, b_hh, w_lin, b_lin):
    """Pure-JAX reference matching PyTorch LSTM + Linear semantics."""
    B = x.shape[0]

    def cell(carry, x_t):
        h, c = carry
        gates = x_t @ w_ih.T + h @ w_hh.T + b_ih + b_hh
        i, f, g, o = jnp.split(gates, 4, axis=-1)
        c = jax.nn.sigmoid(f) * c + jax.nn.sigmoid(i) * jnp.tanh(g)
        h = jax.nn.sigmoid(o) * jnp.tanh(c)
        return (h, c), h

    h0 = jnp.zeros((B, H), jnp.float32)
    c0 = jnp.zeros((B, H), jnp.float32)
    (_, _), hs = lax.scan(cell, (h0, c0), jnp.swapaxes(x, 0, 1))
    last = hs[-1]                    # == lstm_output[:, -1, :]
    return last @ w_lin.T + b_lin


if __name__ == "__main__":
    key = jax.random.PRNGKey(0)
    k_x, k1, k2, k3, k4, k5, k6 = jax.random.split(key, 7)

    B, T = 2, 8
    x = jax.random.normal(k_x, (B, T, IN_SIZE), jnp.float32)

    # Deterministic params with PyTorch-default-style uniform init U(-1/sqrt(H), 1/sqrt(H)).
    bound = 1.0 / np.sqrt(H)
    w_ih = jax.random.uniform(k1, (4 * H, IN_SIZE), jnp.float32, -bound, bound)
    w_hh = jax.random.uniform(k2, (4 * H, H), jnp.float32, -bound, bound)
    b_ih = jax.random.uniform(k3, (4 * H,), jnp.float32, -bound, bound)
    b_hh = jax.random.uniform(k4, (4 * H,), jnp.float32, -bound, bound)
    w_lin = jax.random.uniform(k5, (1, H), jnp.float32, -bound, bound)
    b_lin = jax.random.uniform(k6, (1,), jnp.float32, -bound, bound)

    packed = pack_params(w_ih, w_hh, b_ih, b_hh, w_lin, b_lin)

    y = predicting_model_forward(x, packed)
    y = jax.block_until_ready(y)

    y_ref = reference_forward(x, w_ih, w_hh, b_ih, b_hh, w_lin, b_lin)
    np.testing.assert_allclose(np.asarray(y), np.asarray(y_ref),
                               rtol=1e-5, atol=1e-5)
    assert y.shape == (B, 1)
    print("KERNEL_OK")
</pallas_src>

<mosaic_0001>
module attributes {stable_mosaic.version = 11 : i64} {
  func.func @lstm_kernel(%arg0: memref<8x8x1xf32, #tpu.memory_space<vmem>>, %arg1: memref<1x256xf32, #tpu.memory_space<vmem>>, %arg2: memref<1x256xf32, #tpu.memory_space<vmem>>, %arg3: memref<64x256xf32, #tpu.memory_space<vmem>>, %arg4: memref<1x64xf32, #tpu.memory_space<vmem>>, %arg5: memref<1x1xf32, #tpu.memory_space<vmem>>, %arg6: memref<8x128xf32, #tpu.memory_space<vmem>>, %arg7: memref<8x8x256xf32, #tpu.memory_space<vmem>>) attributes {dimension_semantics = [], scalar_prefetch = 0 : i64, scratch_operands = 1 : i64, tpu.core_type = #tpu.core_type<tc>} {
    %c0 = arith.constant 0 : index
    %c0_0 = arith.constant 0 : index
    %c0_1 = arith.constant 0 : index
    %0 = vector.load %arg0[%c0, %c0_0, %c0_1] : memref<8x8x1xf32, #tpu.memory_space<vmem>>, vector<8x8x1xf32>
    %c0_2 = arith.constant 0 : index
    %c0_3 = arith.constant 0 : index
    %1 = vector.load %arg1[%c0_2, %c0_3] : memref<1x256xf32, #tpu.memory_space<vmem>>, vector<1x256xf32>
    %2 = vector.shape_cast %1 : vector<1x256xf32> to vector<1x1x256xf32>
    %3 = vector.broadcast %0 : vector<8x8x1xf32> to vector<8x8x256xf32>
    %4 = vector.broadcast %2 : vector<1x1x256xf32> to vector<8x8x256xf32>
    %5 = arith.mulf %3, %4 : vector<8x8x256xf32>
    %c0_4 = arith.constant 0 : index
    %c0_5 = arith.constant 0 : index
    %6 = vector.load %arg2[%c0_4, %c0_5] : memref<1x256xf32, #tpu.memory_space<vmem>>, vector<1x256xf32>
    %7 = vector.shape_cast %6 : vector<1x256xf32> to vector<1x1x256xf32>
    %8 = vector.broadcast %7 : vector<1x1x256xf32> to vector<8x8x256xf32>
    %9 = arith.addf %5, %8 : vector<8x8x256xf32>
    %c0_6 = arith.constant 0 : index
    %c0_7 = arith.constant 0 : index
    %c0_8 = arith.constant 0 : index
    %10 = vector.load %arg7[%c0_6, %c0_7, %c0_8] : memref<8x8x256xf32, #tpu.memory_space<vmem>>, vector<8x8x256xf32>
    tpu.vector_store %arg7[%c0_6, %c0_7, %c0_8], %9 {strides = array<i32>} : memref<8x8x256xf32, #tpu.memory_space<vmem>>, vector<8x8x256xf32>,
    %c0_9 = arith.constant 0 : index
    %c0_10 = arith.constant 0 : index
    %11 = vector.load %arg3[%c0_9, %c0_10] : memref<64x256xf32, #tpu.memory_space<vmem>>, vector<64x256xf32>
    %c0_11 = arith.constant 0 : index
    %c0_12 = arith.constant 0 : index
    %12 = vector.load %arg4[%c0_11, %c0_12] : memref<1x64xf32, #tpu.memory_space<vmem>>, vector<1x64xf32>
    %cst = arith.constant 0.000000e+00 : f32
    %13 = vector.broadcast %cst : f32 to vector<8x64xf32>
    %cst_13 = arith.constant 0.000000e+00 : f32
    %14 = vector.broadcast %cst_13 : f32 to vector<8x64xf32>
    %c0_i32 = arith.constant 0 : i32
    %15 = arith.index_cast %c0_i32 : i32 to index
    %c0_14 = arith.constant 0 : index
    %c0_15 = arith.constant 0 : index
    %16 = vector.load %arg7[%15, %c0_14, %c0_15] : memref<8x8x256xf32, #tpu.memory_space<vmem>>, vector<1x8x256xf32>
    %17 = vector.shape_cast %16 : vector<1x8x256xf32> to vector<8x256xf32>
    %cst_16 = arith.constant dense<0.000000e+00> : vector<8x256xf32>
    %18 = tpu.matmul %13, %11, %cst_16 {dimension_numbers = #tpu.dot_dimension_numbers<[1], [0], [0], [1], [0, 0, 1, 1], [], []>} : vector<8x64xf32>, vector<64x256xf32>, vector<8x256xf32> -> vector<8x256xf32>
    %19 = arith.addf %17, %18 : vector<8x256xf32>
    %20 = math.tanh %19 : vector<8x256xf32>
    %21 = vector.extract_strided_slice %20 {offsets = [0, 0], sizes = [8, 64], strides = [1, 1]} : vector<8x256xf32> to vector<8x64xf32>
    %cst_17 = arith.constant 5.000000e-01 : f32
    %22 = vector.broadcast %cst_17 : f32 to vector<8x64xf32>
    %23 = arith.mulf %21, %22 : vector<8x64xf32>
    %cst_18 = arith.constant 5.000000e-01 : f32
    %24 = vector.broadcast %cst_18 : f32 to vector<8x64xf32>
    %25 = arith.addf %23, %24 : vector<8x64xf32>
    %26 = vector.extract_strided_slice %20 {offsets = [0, 64], sizes = [8, 64], strides = [1, 1]} : vector<8x256xf32> to vector<8x64xf32>
    %cst_19 = arith.constant 5.000000e-01 : f32
    %27 = vector.broadcast %cst_19 : f32 to vector<8x64xf32>
    %28 = arith.mulf %26, %27 : vector<8x64xf32>
    %cst_20 = arith.constant 5.000000e-01 : f32
    %29 = vector.broadcast %cst_20 : f32 to vector<8x64xf32>
    %30 = arith.addf %28, %29 : vector<8x64xf32>
    %31 = vector.extract_strided_slice %20 {offsets = [0, 128], sizes = [8, 64], strides = [1, 1]} : vector<8x256xf32> to vector<8x64xf32>
    %32 = vector.extract_strided_slice %20 {offsets = [0, 192], sizes = [8, 64], strides = [1, 1]} : vector<8x256xf32> to vector<8x64xf32>
    %cst_21 = arith.constant 5.000000e-01 : f32
    %33 = vector.broadcast %cst_21 : f32 to vector<8x64xf32>
    %34 = arith.mulf %32, %33 : vector<8x64xf32>
    %cst_22 = arith.constant 5.000000e-01 : f32
    %35 = vector.broadcast %cst_22 : f32 to vector<8x64xf32>
    %36 = arith.addf %34, %35 : vector<8x64xf32>
    %37 = arith.mulf %30, %14 : vector<8x64xf32>
    %38 = arith.mulf %25, %31 : vector<8x64xf32>
    %39 = arith.addf %37, %38 : vector<8x64xf32>
    %40 = math.tanh %39 : vector<8x64xf32>
    %41 = arith.mulf %36, %40 : vector<8x64xf32>
    %c1_i32 = arith.constant 1 : i32
    %42 = arith.index_cast %c1_i32 : i32 to index
    %c0_23 = arith.constant 0 : index
    %c0_24 = arith.constant 0 : index
    %43 = vector.load %arg7[%42, %c0_23, %c0_24] : memref<8x8x256xf32, #tpu.memory_space<vmem>>, vector<1x8x256xf32>
    %44 = vector.shape_cast %43 : vector<1x8x256xf32> to vector<8x256xf32>
    %cst_25 = arith.constant dense<0.000000e+00> : vector<8x256xf32>
    %45 = tpu.matmul %41, %11, %cst_25 {dimension_numbers = #tpu.dot_dimension_numbers<[1], [0], [0], [1], [0, 0, 1, 1], [], []>} : vector<8x64xf32>, vector<64x256xf32>, vector<8x256xf32> -> vector<8x256xf32>
    %46 = arith.addf %44, %45 : vector<8x256xf32>
    %47 = math.tanh %46 : vector<8x256xf32>
    %48 = vector.extract_strided_slice %47 {offsets = [0, 0], sizes = [8, 64], strides = [1, 1]} : vector<8x256xf32> to vector<8x64xf32>
    %cst_26 = arith.constant 5.000000e-01 : f32
    %49 = vector.broadcast %cst_26 : f32 to vector<8x64xf32>
    %50 = arith.mulf %48, %49 : vector<8x64xf32>
    %cst_27 = arith.constant 5.000000e-01 : f32
    %51 = vector.broadcast %cst_27 : f32 to vector<8x64xf32>
    %52 = arith.addf %50, %51 : vector<8x64xf32>
    %53 = vector.extract_strided_slice %47 {offsets = [0, 64], sizes = [8, 64], strides = [1, 1]} : vector<8x256xf32> to vector<8x64xf32>
    %cst_28 = arith.constant 5.000000e-01 : f32
    %54 = vector.broadcast %cst_28 : f32 to vector<8x64xf32>
    %55 = arith.mulf %53, %54 : vector<8x64xf32>
    %cst_29 = arith.constant 5.000000e-01 : f32
    %56 = vector.broadcast %cst_29 : f32 to vector<8x64xf32>
    %57 = arith.addf %55, %56 : vector<8x64xf32>
    %58 = vector.extract_strided_slice %47 {offsets = [0, 128], sizes = [8, 64], strides = [1, 1]} : vector<8x256xf32> to vector<8x64xf32>
    %59 = vector.extract_strided_slice %47 {offsets = [0, 192], sizes = [8, 64], strides = [1, 1]} : vector<8x256xf32> to vector<8x64xf32>
    %cst_30 = arith.constant 5.000000e-01 : f32
    %60 = vector.broadcast %cst_30 : f32 to vector<8x64xf32>
    %61 = arith.mulf %59, %60 : vector<8x64xf32>
    %cst_31 = arith.constant 5.000000e-01 : f32
    %62 = vector.broadcast %cst_31 : f32 to vector<8x64xf32>
    %63 = arith.addf %61, %62 : vector<8x64xf32>
    %64 = arith.mulf %57, %39 : vector<8x64xf32>
    %65 = arith.mulf %52, %58 : vector<8x64xf32>
    %66 = arith.addf %64, %65 : vector<8x64xf32>
    %67 = math.tanh %66 : vector<8x64xf32>
    %68 = arith.mulf %63, %67 : vector<8x64xf32>
    %c2_i32 = arith.constant 2 : i32
    %69 = arith.index_cast %c2_i32 : i32 to index
    %c0_32 = arith.constant 0 : index
    %c0_33 = arith.constant 0 : index
    %70 = vector.load %arg7[%69, %c0_32, %c0_33] : memref<8x8x256xf32, #tpu.memory_space<vmem>>, vector<1x8x256xf32>
    %71 = vector.shape_cast %70 : vector<1x8x256xf32> to vector<8x256xf32>
    %cst_34 = arith.constant dense<0.000000e+00> : vector<8x256xf32>
    %72 = tpu.matmul %68, %11, %cst_34 {dimension_numbers = #tpu.dot_dimension_numbers<[1], [0], [0], [1], [0, 0, 1, 1], [], []>} : vector<8x64xf32>, vector<64x256xf32>, vector<8x256xf32> -> vector<8x256xf32>
    %73 = arith.addf %71, %72 : vector<8x256xf32>
    %74 = math.tanh %73 : vector<8x256xf32>
    %75 = vector.extract_strided_slice %74 {offsets = [0, 0], sizes = [8, 64], strides = [1, 1]} : vector<8x256xf32> to vector<8x64xf32>
    %cst_35 = arith.constant 5.000000e-01 : f32
    %76 = vector.broadcast %cst_35 : f32 to vector<8x64xf32>
    %77 = arith.mulf %75, %76 : vector<8x64xf32>
    %cst_36 = arith.constant 5.000000e-01 : f32
    %78 = vector.broadcast %cst_36 : f32 to vector<8x64xf32>
    %79 = arith.addf %77, %78 : vector<8x64xf32>
    %80 = vector.extract_strided_slice %74 {offsets = [0, 64], sizes = [8, 64], strides = [1, 1]} : vector<8x256xf32> to vector<8x64xf32>
    %cst_37 = arith.constant 5.000000e-01 : f32
    %81 = vector.broadcast %cst_37 : f32 to vector<8x64xf32>
    %82 = arith.mulf %80, %81 : vector<8x64xf32>
    %cst_38 = arith.constant 5.000000e-01 : f32
    %83 = vector.broadcast %cst_38 : f32 to vector<8x64xf32>
    %84 = arith.addf %82, %83 : vector<8x64xf32>
    %85 = vector.extract_strided_slice %74 {offsets = [0, 128], sizes = [8, 64], strides = [1, 1]} : vector<8x256xf32> to vector<8x64xf32>
    %86 = vector.extract_strided_slice %74 {offsets = [0, 192], sizes = [8, 64], strides = [1, 1]} : vector<8x256xf32> to vector<8x64xf32>
    %cst_39 = arith.constant 5.000000e-01 : f32
    %87 = vector.broadcast %cst_39 : f32 to vector<8x64xf32>
    %88 = arith.mulf %86, %87 : vector<8x64xf32>
    %cst_40 = arith.constant 5.000000e-01 : f32
    %89 = vector.broadcast %cst_40 : f32 to vector<8x64xf32>
    %90 = arith.addf %88, %89 : vector<8x64xf32>
    %91 = arith.mulf %84, %66 : vector<8x64xf32>
    %92 = arith.mulf %79, %85 : vector<8x64xf32>
    %93 = arith.addf %91, %92 : vector<8x64xf32>
    %94 = math.tanh %93 : vector<8x64xf32>
    %95 = arith.mulf %90, %94 : vector<8x64xf32>
    %c3_i32 = arith.constant 3 : i32
    %96 = arith.index_cast %c3_i32 : i32 to index
    %c0_41 = arith.constant 0 : index
    %c0_42 = arith.constant 0 : index
    %97 = vector.load %arg7[%96, %c0_41, %c0_42] : memref<8x8x256xf32, #tpu.memory_space<vmem>>, vector<1x8x256xf32>
    %98 = vector.shape_cast %97 : vector<1x8x256xf32> to vector<8x256xf32>
    %cst_43 = arith.constant dense<0.000000e+00> : vector<8x256xf32>
    %99 = tpu.matmul %95, %11, %cst_43 {dimension_numbers = #tpu.dot_dimension_numbers<[1], [0], [0], [1], [0, 0, 1, 1], [], []>} : vector<8x64xf32>, vector<64x256xf32>, vector<8x256xf32> -> vector<8x256xf32>
    %100 = arith.addf %98, %99 : vector<8x256xf32>
    %101 = math.tanh %100 : vector<8x256xf32>
    %102 = vector.extract_strided_slice %101 {offsets = [0, 0], sizes = [8, 64], strides = [1, 1]} : vector<8x256xf32> to vector<8x64xf32>
    %cst_44 = arith.constant 5.000000e-01 : f32
    %103 = vector.broadcast %cst_44 : f32 to vector<8x64xf32>
    %104 = arith.mulf %102, %103 : vector<8x64xf32>
    %cst_45 = arith.constant 5.000000e-01 : f32
    %105 = vector.broadcast %cst_45 : f32 to vector<8x64xf32>
    %106 = arith.addf %104, %105 : vector<8x64xf32>
    %107 = vector.extract_strided_slice %101 {offsets = [0, 64], sizes = [8, 64], strides = [1, 1]} : vector<8x256xf32> to vector<8x64xf32>
    %cst_46 = arith.constant 5.000000e-01 : f32
    %108 = vector.broadcast %cst_46 : f32 to vector<8x64xf32>
    %109 = arith.mulf %107, %108 : vector<8x64xf32>
    %cst_47 = arith.constant 5.000000e-01 : f32
    %110 = vector.broadcast %cst_47 : f32 to vector<8x64xf32>
    %111 = arith.addf %109, %110 : vector<8x64xf32>
    %112 = vector.extract_strided_slice %101 {offsets = [0, 128], sizes = [8, 64], strides = [1, 1]} : vector<8x256xf32> to vector<8x64xf32>
    %113 = vector.extract_strided_slice %101 {offsets = [0, 192], sizes = [8, 64], strides = [1, 1]} : vector<8x256xf32> to vector<8x64xf32>
    %cst_48 = arith.constant 5.000000e-01 : f32
    %114 = vector.broadcast %cst_48 : f32 to vector<8x64xf32>
    %115 = arith.mulf %113, %114 : vector<8x64xf32>
    %cst_49 = arith.constant 5.000000e-01 : f32
    %116 = vector.broadcast %cst_49 : f32 to vector<8x64xf32>
    %117 = arith.addf %115, %116 : vector<8x64xf32>
    %118 = arith.mulf %111, %93 : vector<8x64xf32>
    %119 = arith.mulf %106, %112 : vector<8x64xf32>
    %120 = arith.addf %118, %119 : vector<8x64xf32>
    %121 = math.tanh %120 : vector<8x64xf32>
    %122 = arith.mulf %117, %121 : vector<8x64xf32>
    %c4_i32 = arith.constant 4 : i32
    %123 = arith.index_cast %c4_i32 : i32 to index
    %c0_50 = arith.constant 0 : index
    %c0_51 = arith.constant 0 : index
    %124 = vector.load %arg7[%123, %c0_50, %c0_51] : memref<8x8x256xf32, #tpu.memory_space<vmem>>, vector<1x8x256xf32>
    %125 = vector.shape_cast %124 : vector<1x8x256xf32> to vector<8x256xf32>
    %cst_52 = arith.constant dense<0.000000e+00> : vector<8x256xf32>
    %126 = tpu.matmul %122, %11, %cst_52 {dimension_numbers = #tpu.dot_dimension_numbers<[1], [0], [0], [1], [0, 0, 1, 1], [], []>} : vector<8x64xf32>, vector<64x256xf32>, vector<8x256xf32> -> vector<8x256xf32>
    %127 = arith.addf %125, %126 : vector<8x256xf32>
    %128 = math.tanh %127 : vector<8x256xf32>
    %129 = vector.extract_strided_slice %128 {offsets = [0, 0], sizes = [8, 64], strides = [1, 1]} : vector<8x256xf32> to vector<8x64xf32>
    %cst_53 = arith.constant 5.000000e-01 : f32
    %130 = vector.broadcast %cst_53 : f32 to vector<8x64xf32>
    %131 = arith.mulf %129, %130 : vector<8x64xf32>
    %cst_54 = arith.constant 5.000000e-01 : f32
    %132 = vector.broadcast %cst_54 : f32 to vector<8x64xf32>
    %133 = arith.addf %131, %132 : vector<8x64xf32>
    %134 = vector.extract_strided_slice %128 {offsets = [0, 64], sizes = [8, 64], strides = [1, 1]} : vector<8x256xf32> to vector<8x64xf32>
    %cst_55 = arith.constant 5.000000e-01 : f32
    %135 = vector.broadcast %cst_55 : f32 to vector<8x64xf32>
    %136 = arith.mulf %134, %135 : vector<8x64xf32>
    %cst_56 = arith.constant 5.000000e-01 : f32
    %137 = vector.broadcast %cst_56 : f32 to vector<8x64xf32>
    %138 = arith.addf %136, %137 : vector<8x64xf32>
    %139 = vector.extract_strided_slice %128 {offsets = [0, 128], sizes = [8, 64], strides = [1, 1]} : vector<8x256xf32> to vector<8x64xf32>
    %140 = vector.extract_strided_slice %128 {offsets = [0, 192], sizes = [8, 64], strides = [1, 1]} : vector<8x256xf32> to vector<8x64xf32>
    %cst_57 = arith.constant 5.000000e-01 : f32
    %141 = vector.broadcast %cst_57 : f32 to vector<8x64xf32>
    %142 = arith.mulf %140, %141 : vector<8x64xf32>
    %cst_58 = arith.constant 5.000000e-01 : f32
    %143 = vector.broadcast %cst_58 : f32 to vector<8x64xf32>
    %144 = arith.addf %142, %143 : vector<8x64xf32>
    %145 = arith.mulf %138, %120 : vector<8x64xf32>
    %146 = arith.mulf %133, %139 : vector<8x64xf32>
    %147 = arith.addf %145, %146 : vector<8x64xf32>
    %148 = math.tanh %147 : vector<8x64xf32>
    %149 = arith.mulf %144, %148 : vector<8x64xf32>
    %c5_i32 = arith.constant 5 : i32
    %150 = arith.index_cast %c5_i32 : i32 to index
    %c0_59 = arith.constant 0 : index
    %c0_60 = arith.constant 0 : index
    %151 = vector.load %arg7[%150, %c0_59, %c0_60] : memref<8x8x256xf32, #tpu.memory_space<vmem>>, vector<1x8x256xf32>
    %152 = vector.shape_cast %151 : vector<1x8x256xf32> to vector<8x256xf32>
    %cst_61 = arith.constant dense<0.000000e+00> : vector<8x256xf32>
    %153 = tpu.matmul %149, %11, %cst_61 {dimension_numbers = #tpu.dot_dimension_numbers<[1], [0], [0], [1], [0, 0, 1, 1], [], []>} : vector<8x64xf32>, vector<64x256xf32>, vector<8x256xf32> -> vector<8x256xf32>
    %154 = arith.addf %152, %153 : vector<8x256xf32>
    %155 = math.tanh %154 : vector<8x256xf32>
    %156 = vector.extract_strided_slice %155 {offsets = [0, 0], sizes = [8, 64], strides = [1, 1]} : vector<8x256xf32> to vector<8x64xf32>
    %cst_62 = arith.constant 5.000000e-01 : f32
    %157 = vector.broadcast %cst_62 : f32 to vector<8x64xf32>
    %158 = arith.mulf %156, %157 : vector<8x64xf32>
    %cst_63 = arith.constant 5.000000e-01 : f32
    %159 = vector.broadcast %cst_63 : f32 to vector<8x64xf32>
    %160 = arith.addf %158, %159 : vector<8x64xf32>
    %161 = vector.extract_strided_slice %155 {offsets = [0, 64], sizes = [8, 64], strides = [1, 1]} : vector<8x256xf32> to vector<8x64xf32>
    %cst_64 = arith.constant 5.000000e-01 : f32
    %162 = vector.broadcast %cst_64 : f32 to vector<8x64xf32>
    %163 = arith.mulf %161, %162 : vector<8x64xf32>
    %cst_65 = arith.constant 5.000000e-01 : f32
    %164 = vector.broadcast %cst_65 : f32 to vector<8x64xf32>
    %165 = arith.addf %163, %164 : vector<8x64xf32>
    %166 = vector.extract_strided_slice %155 {offsets = [0, 128], sizes = [8, 64], strides = [1, 1]} : vector<8x256xf32> to vector<8x64xf32>
    %167 = vector.extract_strided_slice %155 {offsets = [0, 192], sizes = [8, 64], strides = [1, 1]} : vector<8x256xf32> to vector<8x64xf32>
    %cst_66 = arith.constant 5.000000e-01 : f32
    %168 = vector.broadcast %cst_66 : f32 to vector<8x64xf32>
    %169 = arith.mulf %167, %168 : vector<8x64xf32>
    %cst_67 = arith.constant 5.000000e-01 : f32
    %170 = vector.broadcast %cst_67 : f32 to vector<8x64xf32>
    %171 = arith.addf %169, %170 : vector<8x64xf32>
    %172 = arith.mulf %165, %147 : vector<8x64xf32>
    %173 = arith.mulf %160, %166 : vector<8x64xf32>
    %174 = arith.addf %172, %173 : vector<8x64xf32>
    %175 = math.tanh %174 : vector<8x64xf32>
    %176 = arith.mulf %171, %175 : vector<8x64xf32>
    %c6_i32 = arith.constant 6 : i32
    %177 = arith.index_cast %c6_i32 : i32 to index
    %c0_68 = arith.constant 0 : index
    %c0_69 = arith.constant 0 : index
    %178 = vector.load %arg7[%177, %c0_68, %c0_69] : memref<8x8x256xf32, #tpu.memory_space<vmem>>, vector<1x8x256xf32>
    %179 = vector.shape_cast %178 : vector<1x8x256xf32> to vector<8x256xf32>
    %cst_70 = arith.constant dense<0.000000e+00> : vector<8x256xf32>
    %180 = tpu.matmul %176, %11, %cst_70 {dimension_numbers = #tpu.dot_dimension_numbers<[1], [0], [0], [1], [0, 0, 1, 1], [], []>} : vector<8x64xf32>, vector<64x256xf32>, vector<8x256xf32> -> vector<8x256xf32>
    %181 = arith.addf %179, %180 : vector<8x256xf32>
    %182 = math.tanh %181 : vector<8x256xf32>
    %183 = vector.extract_strided_slice %182 {offsets = [0, 0], sizes = [8, 64], strides = [1, 1]} : vector<8x256xf32> to vector<8x64xf32>
    %cst_71 = arith.constant 5.000000e-01 : f32
    %184 = vector.broadcast %cst_71 : f32 to vector<8x64xf32>
    %185 = arith.mulf %183, %184 : vector<8x64xf32>
    %cst_72 = arith.constant 5.000000e-01 : f32
    %186 = vector.broadcast %cst_72 : f32 to vector<8x64xf32>
    %187 = arith.addf %185, %186 : vector<8x64xf32>
    %188 = vector.extract_strided_slice %182 {offsets = [0, 64], sizes = [8, 64], strides = [1, 1]} : vector<8x256xf32> to vector<8x64xf32>
    %cst_73 = arith.constant 5.000000e-01 : f32
    %189 = vector.broadcast %cst_73 : f32 to vector<8x64xf32>
    %190 = arith.mulf %188, %189 : vector<8x64xf32>
    %cst_74 = arith.constant 5.000000e-01 : f32
    %191 = vector.broadcast %cst_74 : f32 to vector<8x64xf32>
    %192 = arith.addf %190, %191 : vector<8x64xf32>
    %193 = vector.extract_strided_slice %182 {offsets = [0, 128], sizes = [8, 64], strides = [1, 1]} : vector<8x256xf32> to vector<8x64xf32>
    %194 = vector.extract_strided_slice %182 {offsets = [0, 192], sizes = [8, 64], strides = [1, 1]} : vector<8x256xf32> to vector<8x64xf32>
    %cst_75 = arith.constant 5.000000e-01 : f32
    %195 = vector.broadcast %cst_75 : f32 to vector<8x64xf32>
    %196 = arith.mulf %194, %195 : vector<8x64xf32>
    %cst_76 = arith.constant 5.000000e-01 : f32
    %197 = vector.broadcast %cst_76 : f32 to vector<8x64xf32>
    %198 = arith.addf %196, %197 : vector<8x64xf32>
    %199 = arith.mulf %192, %174 : vector<8x64xf32>
    %200 = arith.mulf %187, %193 : vector<8x64xf32>
    %201 = arith.addf %199, %200 : vector<8x64xf32>
    %202 = math.tanh %201 : vector<8x64xf32>
    %203 = arith.mulf %198, %202 : vector<8x64xf32>
    %c7_i32 = arith.constant 7 : i32
    %204 = arith.index_cast %c7_i32 : i32 to index
    %c0_77 = arith.constant 0 : index
    %c0_78 = arith.constant 0 : index
    %205 = vector.load %arg7[%204, %c0_77, %c0_78] : memref<8x8x256xf32, #tpu.memory_space<vmem>>, vector<1x8x256xf32>
    %206 = vector.shape_cast %205 : vector<1x8x256xf32> to vector<8x256xf32>
    %cst_79 = arith.constant dense<0.000000e+00> : vector<8x256xf32>
    %207 = tpu.matmul %203, %11, %cst_79 {dimension_numbers = #tpu.dot_dimension_numbers<[1], [0], [0], [1], [0, 0, 1, 1], [], []>} : vector<8x64xf32>, vector<64x256xf32>, vector<8x256xf32> -> vector<8x256xf32>
    %208 = arith.addf %206, %207 : vector<8x256xf32>
    %209 = math.tanh %208 : vector<8x256xf32>
    %210 = vector.extract_strided_slice %209 {offsets = [0, 0], sizes = [8, 64], strides = [1, 1]} : vector<8x256xf32> to vector<8x64xf32>
    %cst_80 = arith.constant 5.000000e-01 : f32
    %211 = vector.broadcast %cst_80 : f32 to vector<8x64xf32>
    %212 = arith.mulf %210, %211 : vector<8x64xf32>
    %cst_81 = arith.constant 5.000000e-01 : f32
    %213 = vector.broadcast %cst_81 : f32 to vector<8x64xf32>
    %214 = arith.addf %212, %213 : vector<8x64xf32>
    %215 = vector.extract_strided_slice %209 {offsets = [0, 64], sizes = [8, 64], strides = [1, 1]} : vector<8x256xf32> to vector<8x64xf32>
    %cst_82 = arith.constant 5.000000e-01 : f32
    %216 = vector.broadcast %cst_82 : f32 to vector<8x64xf32>
    %217 = arith.mulf %215, %216 : vector<8x64xf32>
    %cst_83 = arith.constant 5.000000e-01 : f32
    %218 = vector.broadcast %cst_83 : f32 to vector<8x64xf32>
    %219 = arith.addf %217, %218 : vector<8x64xf32>
    %220 = vector.extract_strided_slice %209 {offsets = [0, 128], sizes = [8, 64], strides = [1, 1]} : vector<8x256xf32> to vector<8x64xf32>
    %221 = vector.extract_strided_slice %209 {offsets = [0, 192], sizes = [8, 64], strides = [1, 1]} : vector<8x256xf32> to vector<8x64xf32>
    %cst_84 = arith.constant 5.000000e-01 : f32
    %222 = vector.broadcast %cst_84 : f32 to vector<8x64xf32>
    %223 = arith.mulf %221, %222 : vector<8x64xf32>
    %cst_85 = arith.constant 5.000000e-01 : f32
    %224 = vector.broadcast %cst_85 : f32 to vector<8x64xf32>
    %225 = arith.addf %223, %224 : vector<8x64xf32>
    %226 = arith.mulf %219, %201 : vector<8x64xf32>
    %227 = arith.mulf %214, %220 : vector<8x64xf32>
    %228 = arith.addf %226, %227 : vector<8x64xf32>
    %229 = math.tanh %228 : vector<8x64xf32>
    %230 = arith.mulf %225, %229 : vector<8x64xf32>
    %c8_i32 = arith.constant 8 : i32
    %231 = vector.broadcast %12 : vector<1x64xf32> to vector<8x64xf32>
    %232 = arith.mulf %230, %231 : vector<8x64xf32>
    %cst_86 = arith.constant dense<0.000000e+00> : vector<8xf32>
    %233 = vector.multi_reduction <add>, %232, %cst_86 [1] : vector<8x64xf32> to vector<8xf32>
    %234 = vector.shape_cast %233 : vector<8xf32> to vector<8x1xf32>
    %c0_87 = arith.constant 0 : index
    %c0_88 = arith.constant 0 : index
    %235 = vector.load %arg5[%c0_87, %c0_88] : memref<1x1xf32, #tpu.memory_space<vmem>>, vector<1x1xf32>
    %236 = vector.broadcast %235 : vector<1x1xf32> to vector<8x1xf32>
    %237 = arith.addf %234, %236 : vector<8x1xf32>
    %238 = vector.shape_cast %237 : vector<8x1xf32> to vector<8x1xf32>
    %239 = vector.broadcast %238 : vector<8x1xf32> to vector<8x128xf32>
    %c0_89 = arith.constant 0 : index
    %c0_90 = arith.constant 0 : index
    %240 = vector.load %arg6[%c0_89, %c0_90] : memref<8x128xf32, #tpu.memory_space<vmem>>, vector<8x128xf32>
    tpu.vector_store %arg6[%c0_89, %c0_90], %239 {strides = array<i32>} : memref<8x128xf32, #tpu.memory_space<vmem>>, vector<8x128xf32>,
    return
  }
}

</mosaic_0001>

<bundles_post_ra>
// kernel: tpu_custom_call.1
= control target key start
LH: loop header
LB: loop body
LE: loop exit
PB: predicated region body
PF: predicated region fallthrough
CT: control target
= control target key end

     0   :  { %s1486_s0 = inlined_call_operand.vmem [shape: f32[8,8,1], index: 0, kind: input, shape index: {}]   ;;  %s1487_s1 = inlined_call_operand.vmem [shape: f32[1,256], index: 1, kind: input, shape index: {}]   ;;  %s1488_s2 = inlined_call_operand.vmem [shape: f32[1,256], index: 2, kind: input, shape index: {}]   ;;  %s1489_s3 = inlined_call_operand.hbm [shape: f32[64,256], index: 3, kind: input, shape index: {}]   ;;  %s1490_s4 = inlined_call_operand.vmem [shape: f32[1,64], index: 4, kind: input, shape index: {}]   ;;  %s1491_s5 = inlined_call_operand.<no memory space> [shape: f32[1,1], index: 5, kind: input, shape index: {}]   ;;  %s1492_s6 = inlined_call_operand.hbm [shape: f32[8,128], index: 6, kind: output, shape index: {}]  }
   0x1   :  { %v11_v0 = vstv %s1491_s5 }
   0x2   :  { %12 = vst [vmem:[#allocation3] sm:$0x1] %v11_v0 }
   0x3   :  { %13 = vsyncpa [#allocation5], 0 }
   0x4   :  { %14 = vsyncpa [#allocation6], 0  ;;  %s1230_s23 = smov [#allocation4]   ;;  %s1182_s27 = scalar_lea.hbm %s1489_s3, 2048 }
   0x5   :  { %s26_s24 = sshll.u32 %s1230_s23, 4  ;;  %p1183_p0 = scmp.ne.s32.totalorder %s1489_s3, %s1182_s27  ;;  %s27_s24 = int_to_ptr.vmem [resolvable:$true] %s26_s24 }
   0x6   :  { %p1186_p1 = scmp.lt.u32.totalorder %s1182_s27, %s1489_s3 }
   0x8   :  { %p1188_p2 = pnand %p1186_p1, %p1183_p0 }
   0xa   :  { %1191 = shalt.err (!%p1188_p2)
}
   0xb   :  { %s1192_s5 = scalar_lea.vmem %s27_s24, 2048  ;;  %p1197_p4 = scmp.lt.s32.totalorder %s27_s24, %s27_s24 }
   0xc   :  { %p1193_p3 = scmp.ne.s32.totalorder %s27_s24, %s1192_s5  ;;  %p1198_p5 = scmp.lt.s32.totalorder %s1192_s5, %s1192_s5 }
   0xe   :  { %p1199_p6 = por %p1198_p5, %p1197_p4 }
  0x10   :  { %p1200_p7 = pnand %p1199_p6, %p1193_p3 }
  0x12   :  { %1203 = shalt.err (!%p1200_p7)
}
  0x13   :  { %s1231_s8 = smov 256   ;;  %s1232_s9 = smov 16  }
  0x14   :  { %32 = dma.hbm_to_vmem [thread:$0]  %s1489_s3, 2048, %s27_s24, [#allocation5], %s1231_s8, %s1231_s8, %s1232_s9  }
  0x15   :  { %1226 = dma.done.wait [#allocation5], 2048  }
  0x16   :  { %1227 = vsyncadd [#allocation5], 4294965248  ;;  %v1233_v1 = vmov 0.0   ;;  %v1234_v2 = vmov 0   ;;  %v161_v3 = vld [vmem:[#allocation4 + $0x8] sm:$0xff]  ;;  %v163_v4 = vld [vmem:[#allocation4 + $0x18] sm:$0xff]  ;;  %v90_v28 = vlaneseq }
  0x17   :  { %247 = vmatprep.mubr.f32.mxu0 %v1233_v1  ;;  %1132 = vset.pattern.permute.xlu0 %v1234_v2  ;;  %v160_v5 = vld [vmem:[#allocation4] sm:$0xff]  ;;  %v1289_v6 = vpack.c.bf16 %v163_v4, %v161_v3  ;;  %v162_v7 = vld [vmem:[#allocation4 + $0x10] sm:$0xff]  ;;  %v165_v8 = vld [vmem:[#allocation4 + $0x28] sm:$0xff]  ;;  %vm179_vm0 = vcmask 523264  }
  0x18   :  { %343 = vmatprep.mubr.f32.mxu1 %v1233_v1  ;;  %1133 = vset.pattern.permute.xlu1 %v1234_v2  ;;  %v167_v9 = vld [vmem:[#allocation4 + $0x38] sm:$0xff]  ;;  %v1291_v10 = vpack.c.bf16 %v162_v7, %v160_v5  ;;  %v164_v12 = vld [vmem:[#allocation4 + $0x20] sm:$0xff]  ;;  %v166_v13 = vld [vmem:[#allocation4 + $0x30] sm:$0xff]  ;;  %v91_v29 = vshrl.u32 %v90_v28, 7 }
  0x19   :  { %v1293_v11 = vpack.c.bf16 %v167_v9, %v165_v8  ;;  %v169_v14 = vld [vmem:[#allocation4 + $0x48] sm:$0xff]  ;;  %998 = vmatprep.subr.bf16.mxu0 %v1289_v6  ;;  %v171_v15 = vld [vmem:[#allocation4 + $0x58] sm:$0xff]  ;;  %1014 = vmatprep.subr.bf16.mxu1 %v1289_v6  ;;  %v1298_v16 = vpack.c.bf16 %v166_v13, %v164_v12  ;;  %v168_v18 = vld [vmem:[#allocation4 + $0x40] sm:$0xff] }
  0x1a   :  { %1000 = vmatpush1.bf16.msra.mxu0 %v1291_v10  ;;  %1016 = vmatpush1.bf16.msra.mxu1 %v1291_v10  ;;  %v1302_v17 = vpack.c.bf16 %v171_v15, %v169_v14  ;;  %v170_v19 = vld [vmem:[#allocation4 + $0x50] sm:$0xff]  ;;  %v40_v20 = vld [vmem:[%s1486_s0] sm:$0xff]  ;;  %v173_v21 = vld [vmem:[#allocation4 + $0x68] sm:$0xff]  ;;  %v92_v30 = vsub.s32 0, %v91_v29  ;;  %v96_v32 = vsub.s32 1, %v91_v29 }
  0x1b   :  { %1002 = vmatprep.subr.bf16.mxu0 %v1293_v11  ;;  %1018 = vmatprep.subr.bf16.mxu1 %v1293_v11  ;;  %v175_v22 = vld [vmem:[#allocation4 + $0x78] sm:$0xff]  ;;  %v1309_v23 = vpack.c.bf16 %v170_v19, %v168_v18  ;;  %v172_v25 = vld [vmem:[#allocation4 + $0x60] sm:$0xff]  ;;  %v174_v26 = vld [vmem:[#allocation4 + $0x70] sm:$0xff] }
  0x1c   :  { %51 = vperm.xlu0 %1132, %v40_v20   ;;  %v1313_v24 = vpack.c.bf16 %v175_v22, %v173_v21  ;;  %v1317_v27 = vpack.c.bf16 %v174_v26, %v172_v25  ;;  %v48_v31 = vld [vmem:[%s1487_s1] sm:$0x3]  ;;  %s1235_s1 = smov 64   ;;  %v41_v59 = vld [vmem:[%s1486_s0 + $0x8] sm:$0xff]  ;;  %v42_v15 = vld [vmem:[%s1486_s0 + $0x10] sm:$0xff] }
  0x1d   :  { %v1339_v33 = vrot.slane %v48_v31, %v92_v30  ;;  %v116_v35 = vld [vmem:[%s1488_s2] sm:$0x3]  ;;  %v1344_v36 = vrot.slane %v48_v31, %v96_v32 }
  0x1e   :  { %1004 = vmatpush1.bf16.msra.mxu0 %v1298_v16  ;;  %1020 = vmatpush1.bf16.msra.mxu1 %v1298_v16  ;;  %v1347_v38 = vrot.slane %v116_v35, %v92_v30  ;;  %v1350_v40 = vrot.slane %v116_v35, %v96_v32 }
  0x1f   :  { %1006 = vmatprep.subr.bf16.mxu0 %v1302_v17  ;;  %1022 = vmatprep.subr.bf16.mxu1 %v1302_v17 }
  0x22   :  { %1008 = vmatpush1.bf16.msra.mxu0 %v1309_v23  ;;  %1024 = vmatpush1.bf16.msra.mxu1 %v1309_v23 }
  0x23   :  { %1010 = vmatprep.subr.bf16.mxu0 %v1313_v24  ;;  %1026 = vmatprep.subr.bf16.mxu1 %v1313_v24 }
  0x26   :  { %1012 = vmatpush1.bf16.msra.mxu0 %v1317_v27  ;;  %1028 = vmatpush1.bf16.msra.mxu1 %v1317_v27 }
  0x27   :  { %1030 = vmatprep.subr.bf16.mxu0 %v1289_v6  ;;  %1046 = vmatprep.subr.bf16.mxu1 %v1289_v6 }
  0x29   :  { %248 = vmatmul.mubr.f32.vlgmr.msra.gmra.mrb[0].mxu0 %v1233_v1 }
  0x2a   :  { %1032 = vmatpush1.bf16.msra.mxu0 %v1291_v10  ;;  %439 = vmatprep.mubr.f32.mxu0 %v1233_v1 }
  0x2b   :  { %1034 = vmatprep.subr.bf16.mxu0 %v1293_v11 }
  0x2e   :  { %1036 = vmatpush1.bf16.msra.mxu0 %v1298_v16 }
  0x2f   :  { %1038 = vmatprep.subr.bf16.mxu0 %v1302_v17 }
  0x32   :  { %1040 = vmatpush1.bf16.msra.mxu0 %v1309_v23 }
  0x33   :  { %1042 = vmatprep.subr.bf16.mxu0 %v1313_v24 }
  0x36   :  { %1044 = vmatpush1.bf16.msra.mxu0 %v1317_v27 }
  0x37   :  { %1062 = vmatprep.subr.bf16.mxu0 %v1289_v6 }
  0x9b   :  { %v52_v34 = vpop.permute.xlu0 %51 }
  0x9c   :  { %v100_v37 = vmul.f32 %v1339_v33, %v52_v34  ;;  %v101_v39 = vmul.f32 %v1344_v36, %v52_v34 }
  0x9e   :  { %v128_v41 = vadd.f32 %v1347_v38, %v100_v37  ;;  %v129_v42 = vadd.f32 %v1350_v40, %v101_v39 }
  0xfc   :  { %v249_v43 = vpop.f32.mrb[0].mxu0 }
  0xfd   :  { %v254_v44 = vadd.f32 %v249_v43, %v128_v41  ;;  %v251_v45 = vpop.f32.mrb[1].mxu0 }
  0xfe   :  { %v255_v46 = vadd.f32 %v251_v45, %v129_v42 }
  0xff   :  { %1134 = vtanh.f32 %v254_v44 }
 0x100   :  { %1136 = vtanh.f32 %v255_v46 }
 0x109   :  { %v1135_v47 = vpop.eup %1134 }
 0x10a   :  { %v258_v48 = vmul.f32 0.5, %v1135_v47  ;;  %v1137_v50 = vpop.eup %1136  ;;  %v43_v47 = vld [vmem:[%s1486_s0 + $0x18] sm:$0xff] }
 0x10b   :  { %v260_v55 = vmul.f32 0.5, %v1137_v50 }
 0x10c   :  { %v259_v49 = vadd.f32 0.5, %v258_v48 }
 0x10d   :  { %v261_v56 = vadd.f32 0.5, %v260_v55 }
 0x10e   :  { %v263_v51 = vmul.f32 %v1137_v50, %v259_v49  ;;  %v262_v52 = vmul.f32 0.0, %v259_v49 }
 0x110   :  { %265 = vrot.lane.b32.xlu0 %v263_v51, %s1235_s1 }
 0x182   :  { %v266_v53 = vpop.permute.xlu0 %265 }
 0x183   :  { %v268_v54 = vadd.f32 %v266_v53, %v262_v52 }
 0x185   :  { %1138 = vtanh.f32 %v268_v54 }
 0x18f   :  { %v1139_v57 = vpop.eup %1138 }
 0x190   :  { %v270_v58 = vmul.f32 %v1139_v57, %v261_v56 }
 0x192   :  { %275 = vrot.lane.b32.xlu1 %v270_v58, %s1235_s1 }
 0x196   :  { %56 = vperm.xlu1 %1133, %v41_v59  }
 0x204   :  { %v276_v60 = vpop.permute.xlu1 %275 }
 0x205   :  { %988 = vmatmul.mubr.msk.f32.vlgmr.msra.gmra.mrb[0].mxu1 %vm179_vm0, %v276_v60 }
 0x206   :  { %1048 = vmatpush1.bf16.msra.mxu1 %v1291_v10  ;;  %535 = vmatprep.mubr.f32.mxu1 %v1233_v1 }
 0x207   :  { %1050 = vmatprep.subr.bf16.mxu1 %v1293_v11 }
 0x20a   :  { %1052 = vmatpush1.bf16.msra.mxu1 %v1298_v16 }
 0x20b   :  { %1054 = vmatprep.subr.bf16.mxu1 %v1302_v17 }
 0x20e   :  { %1056 = vmatpush1.bf16.msra.mxu1 %v1309_v23 }
 0x20f   :  { %1058 = vmatprep.subr.bf16.mxu1 %v1313_v24 }
 0x212   :  { %1060 = vmatpush1.bf16.msra.mxu1 %v1317_v27 }
 0x213   :  { %1078 = vmatprep.subr.bf16.mxu1 %v1289_v6 }
 0x215   :  { %v57_v61 = vpop.permute.xlu1 %56 }
 0x216   :  { %v102_v62 = vmul.f32 %v1339_v33, %v57_v61  ;;  %v103_v63 = vmul.f32 %v1344_v36, %v57_v61 }
 0x218   :  { %v130_v0 = vadd.f32 %v1347_v38, %v102_v62  ;;  %v131_v2 = vadd.f32 %v1350_v40, %v103_v63 }
 0x2d8   :  { %v345_v3 = vpop.f32.mrb[0].mxu1 }
 0x2d9   :  { %v350_v4 = vadd.f32 %v345_v3, %v130_v0  ;;  %v347_v5 = vpop.f32.mrb[1].mxu1 }
 0x2da   :  { %v351_v7 = vadd.f32 %v347_v5, %v131_v2 }
 0x2db   :  { %1140 = vtanh.f32 %v350_v4 }
 0x2dc   :  { %1142 = vtanh.f32 %v351_v7  ;;  %v44_v7 = vld [vmem:[%s1486_s0 + $0x20] sm:$0xff] }
 0x2e5   :  { %v1141_v8 = vpop.eup %1140 }
 0x2e6   :  { %v354_v9 = vmul.f32 0.5, %v1141_v8  ;;  %v1143_v13 = vpop.eup %1142 }
 0x2e7   :  { %v356_v21 = vmul.f32 0.5, %v1143_v13 }
 0x2e8   :  { %v355_v12 = vadd.f32 0.5, %v354_v9 }
 0x2e9   :  { %v357_v22 = vadd.f32 0.5, %v356_v21 }
 0x2ea   :  { %v359_v14 = vmul.f32 %v1143_v13, %v355_v12  ;;  %v358_v18 = vmul.f32 %v355_v12, %v268_v54 }
 0x2ec   :  { %361 = vrot.lane.b32.xlu0 %v359_v14, %s1235_s1 }
 0x2f0   :  { %61 = vperm.xlu0 %1132, %v42_v15  }
 0x35e   :  { %v362_v19 = vpop.permute.xlu0 %361 }
 0x35f   :  { %v364_v20 = vadd.f32 %v362_v19, %v358_v18 }
 0x361   :  { %1144 = vtanh.f32 %v364_v20 }
 0x36b   :  { %v1145_v25 = vpop.eup %1144 }
 0x36c   :  { %v366_v26 = vmul.f32 %v1145_v25, %v357_v22 }
 0x36e   :  { %371 = vrot.lane.b32.xlu1 %v366_v26, %s1235_s1 }
 0x36f   :  { %v62_v29 = vpop.permute.xlu0 %61 }
 0x370   :  { %v104_v30 = vmul.f32 %v1339_v33, %v62_v29  ;;  %v105_v31 = vmul.f32 %v1344_v36, %v62_v29 }
 0x372   :  { %v132_v32 = vadd.f32 %v1347_v38, %v104_v30  ;;  %v133_v37 = vadd.f32 %v1350_v40, %v105_v31 }
 0x3e0   :  { %v372_v28 = vpop.permute.xlu1 %371 }
 0x3e1   :  { %989 = vmatmul.mubr.msk.f32.vlgmr.msra.gmra.mrb[2].mxu0 %vm179_vm0, %v372_v28 }
 0x3e2   :  { %1064 = vmatpush1.bf16.msra.mxu0 %v1291_v10  ;;  %631 = vmatprep.mubr.f32.mxu0 %v1233_v1 }
 0x3e3   :  { %1066 = vmatprep.subr.bf16.mxu0 %v1293_v11 }
 0x3e6   :  { %1068 = vmatpush1.bf16.msra.mxu0 %v1298_v16 }
 0x3e7   :  { %1070 = vmatprep.subr.bf16.mxu0 %v1302_v17 }
 0x3ea   :  { %1072 = vmatpush1.bf16.msra.mxu0 %v1309_v23 }
 0x3eb   :  { %1074 = vmatprep.subr.bf16.mxu0 %v1313_v24 }
 0x3ee   :  { %1076 = vmatpush1.bf16.msra.mxu0 %v1317_v27 }
 0x3ef   :  { %1094 = vmatprep.subr.bf16.mxu0 %v1289_v6 }
 0x4b4   :  { %v441_v34 = vpop.f32.mrb[2].mxu0 }
 0x4b5   :  { %v446_v35 = vadd.f32 %v441_v34, %v132_v32  ;;  %v443_v39 = vpop.f32.mrb[3].mxu0 }
 0x4b6   :  { %v447_v41 = vadd.f32 %v443_v39, %v133_v37 }
 0x4b7   :  { %1146 = vtanh.f32 %v446_v35 }
 0x4b8   :  { %1148 = vtanh.f32 %v447_v41  ;;  %v45_v41 = vld [vmem:[%s1486_s0 + $0x28] sm:$0xff] }
 0x4c1   :  { %v1147_v42 = vpop.eup %1146 }
 0x4c2   :  { %v450_v43 = vmul.f32 0.5, %v1147_v42  ;;  %v1149_v45 = vpop.eup %1148 }
 0x4c3   :  { %v452_v51 = vmul.f32 0.5, %v1149_v45 }
 0x4c4   :  { %v451_v44 = vadd.f32 0.5, %v450_v43 }
 0x4c5   :  { %v453_v52 = vadd.f32 0.5, %v452_v51 }
 0x4c6   :  { %v455_v46 = vmul.f32 %v1149_v45, %v451_v44  ;;  %v454_v48 = vmul.f32 %v451_v44, %v364_v20 }
 0x4c8   :  { %457 = vrot.lane.b32.xlu1 %v455_v46, %s1235_s1 }
 0x4cc   :  { %66 = vperm.xlu1 %1133, %v43_v47  }
 0x53a   :  { %v458_v49 = vpop.permute.xlu1 %457 }
 0x53b   :  { %v460_v50 = vadd.f32 %v458_v49, %v454_v48 }
 0x53d   :  { %1150 = vtanh.f32 %v460_v50 }
 0x547   :  { %v1151_v53 = vpop.eup %1150 }
 0x548   :  { %v462_v54 = vmul.f32 %v1151_v53, %v453_v52 }
 0x54a   :  { %467 = vrot.lane.b32.xlu0 %v462_v54, %s1235_s1 }
 0x54b   :  { %v67_v56 = vpop.permute.xlu1 %66 }
 0x54c   :  { %v106_v57 = vmul.f32 %v1339_v33, %v67_v56  ;;  %v107_v58 = vmul.f32 %v1344_v36, %v67_v56  ;;  %v46_v56 = vld [vmem:[%s1486_s0 + $0x30] sm:$0xff] }
 0x54e   :  { %v134_v59 = vadd.f32 %v1347_v38, %v106_v57  ;;  %v135_v62 = vadd.f32 %v1350_v40, %v107_v58 }
 0x5bc   :  { %v468_v55 = vpop.permute.xlu0 %467 }
 0x5bd   :  { %990 = vmatmul.mubr.msk.f32.vlgmr.msra.gmra.mrb[2].mxu1 %vm179_vm0, %v468_v55 }
 0x5be   :  { %1080 = vmatpush1.bf16.msra.mxu1 %v1291_v10  ;;  %727 = vmatprep.mubr.f32.mxu1 %v1233_v1 }
 0x5bf   :  { %1082 = vmatprep.subr.bf16.mxu1 %v1293_v11 }
 0x5c2   :  { %1084 = vmatpush1.bf16.msra.mxu1 %v1298_v16 }
 0x5c3   :  { %1086 = vmatprep.subr.bf16.mxu1 %v1302_v17 }
 0x5c6   :  { %1088 = vmatpush1.bf16.msra.mxu1 %v1309_v23 }
 0x5c7   :  { %1090 = vmatprep.subr.bf16.mxu1 %v1313_v24 }
 0x5ca   :  { %1092 = vmatpush1.bf16.msra.mxu1 %v1317_v27 }
 0x5cb   :  { %1110 = vmatprep.subr.bf16.mxu1 %v1289_v6 }
 0x690   :  { %v537_v60 = vpop.f32.mrb[2].mxu1 }
 0x691   :  { %v542_v61 = vadd.f32 %v537_v60, %v134_v59  ;;  %v539_v63 = vpop.f32.mrb[3].mxu1 }
 0x692   :  { %v543_v0 = vadd.f32 %v539_v63, %v135_v62 }
 0x693   :  { %1152 = vtanh.f32 %v542_v61 }
 0x694   :  { %1154 = vtanh.f32 %v543_v0 }
 0x69d   :  { %v1153_v2 = vpop.eup %1152 }
 0x69e   :  { %v546_v3 = vmul.f32 0.5, %v1153_v2  ;;  %v1155_v5 = vpop.eup %1154 }
 0x69f   :  { %v548_v13 = vmul.f32 0.5, %v1155_v5 }
 0x6a0   :  { %v547_v4 = vadd.f32 0.5, %v546_v3 }
 0x6a1   :  { %v549_v14 = vadd.f32 0.5, %v548_v13 }
 0x6a2   :  { %v551_v6 = vmul.f32 %v1155_v5, %v547_v4  ;;  %v550_v8 = vmul.f32 %v547_v4, %v460_v50 }
 0x6a4   :  { %553 = vrot.lane.b32.xlu0 %v551_v6, %s1235_s1 }
 0x6a8   :  { %71 = vperm.xlu0 %1132, %v44_v7  }
 0x716   :  { %v554_v9 = vpop.permute.xlu0 %553 }
 0x717   :  { %v556_v12 = vadd.f32 %v554_v9, %v550_v8 }
 0x719   :  { %1156 = vtanh.f32 %v556_v12 }
 0x723   :  { %v1157_v15 = vpop.eup %1156 }
 0x724   :  { %v558_v18 = vmul.f32 %v1157_v15, %v549_v14 }
 0x726   :  { %563 = vrot.lane.b32.xlu1 %v558_v18, %s1235_s1 }
 0x727   :  { %v72_v20 = vpop.permute.xlu0 %71 }
 0x728   :  { %v108_v21 = vmul.f32 %v1339_v33, %v72_v20  ;;  %v109_v22 = vmul.f32 %v1344_v36, %v72_v20  ;;  %v47_v20 = vld [vmem:[%s1486_s0 + $0x38] sm:$0xff]  ;;  %s1236_s0 = smov [#allocation7]  }
 0x72a   :  { %v136_v25 = vadd.f32 %v1347_v38, %v108_v21  ;;  %v137_v29 = vadd.f32 %v1350_v40, %v109_v22 }
 0x798   :  { %v564_v19 = vpop.permute.xlu1 %563 }
 0x799   :  { %991 = vmatmul.mubr.msk.f32.vlgmr.msra.gmra.mrb[4].mxu0 %vm179_vm0, %v564_v19 }
 0x79a   :  { %1096 = vmatpush1.bf16.msra.mxu0 %v1291_v10  ;;  %823 = vmatprep.mubr.f32.mxu0 %v1233_v1 }
 0x79b   :  { %1098 = vmatprep.subr.bf16.mxu0 %v1293_v11 }
 0x79e   :  { %1100 = vmatpush1.bf16.msra.mxu0 %v1298_v16 }
 0x79f   :  { %1102 = vmatprep.subr.bf16.mxu0 %v1302_v17 }
 0x7a2   :  { %1104 = vmatpush1.bf16.msra.mxu0 %v1309_v23 }
 0x7a3   :  { %1106 = vmatprep.subr.bf16.mxu0 %v1313_v24 }
 0x7a6   :  { %1108 = vmatpush1.bf16.msra.mxu0 %v1317_v27 }
 0x86c   :  { %v633_v26 = vpop.f32.mrb[4].mxu0 }
 0x86d   :  { %v638_v28 = vadd.f32 %v633_v26, %v136_v25  ;;  %v635_v30 = vpop.f32.mrb[5].mxu0 }
 0x86e   :  { %v639_v31 = vadd.f32 %v635_v30, %v137_v29 }
 0x86f   :  { %1158 = vtanh.f32 %v638_v28 }
 0x870   :  { %1160 = vtanh.f32 %v639_v31 }
 0x879   :  { %v1159_v32 = vpop.eup %1158 }
 0x87a   :  { %v642_v34 = vmul.f32 0.5, %v1159_v32  ;;  %v1161_v37 = vpop.eup %1160  ;;  %v995_v32 = vld [vmem:[%s1490_s4] ss:$0 sm:$0xff]  ;;  %s979_s4 = sshll.u32 %s1236_s0, 4  ;;  %s980_s4 = int_to_ptr.vmem [resolvable:$true] %s979_s4 }
 0x87b   :  { %v644_v45 = vmul.f32 0.5, %v1161_v37  ;;  %s1204_s5 = scalar_lea.vmem %s980_s4, 128  ;;  %p1209_p9 = scmp.lt.s32.totalorder %s980_s4, %s980_s4 }
 0x87c   :  { %v643_v35 = vadd.f32 0.5, %v642_v34  ;;  %p1205_p8 = scmp.ne.s32.totalorder %s980_s4, %s1204_s5  ;;  %p1210_p10 = scmp.lt.s32.totalorder %s1204_s5, %s1204_s5 }
 0x87d   :  { %v645_v46 = vadd.f32 0.5, %v644_v45 }
 0x87e   :  { %v647_v39 = vmul.f32 %v1161_v37, %v643_v35  ;;  %v646_v42 = vmul.f32 %v643_v35, %v556_v12  ;;  %p1211_p11 = por %p1210_p10, %p1209_p9 }
 0x880   :  { %649 = vrot.lane.b32.xlu1 %v647_v39, %s1235_s1  ;;  %p1212_p12 = pnand %p1211_p11, %p1205_p8 }
 0x884   :  { %76 = vperm.xlu1 %1133, %v45_v41  }
 0x8f2   :  { %v650_v43 = vpop.permute.xlu1 %649 }
 0x8f3   :  { %v652_v44 = vadd.f32 %v650_v43, %v646_v42 }
 0x8f5   :  { %1162 = vtanh.f32 %v652_v44 }
 0x8ff   :  { %v1163_v47 = vpop.eup %1162 }
 0x900   :  { %v654_v48 = vmul.f32 %v1163_v47, %v645_v46 }
 0x902   :  { %659 = vrot.lane.b32.xlu0 %v654_v48, %s1235_s1 }
 0x903   :  { %v77_v50 = vpop.permute.xlu1 %76 }
 0x904   :  { %v110_v51 = vmul.f32 %v1339_v33, %v77_v50  ;;  %v111_v52 = vmul.f32 %v1344_v36, %v77_v50 }
 0x974   :  { %v660_v49 = vpop.permute.xlu0 %659 }
 0x975   :  { %992 = vmatmul.mubr.msk.f32.vlgmr.msra.gmra.mrb[4].mxu1 %vm179_vm0, %v660_v49 }
 0x976   :  { %1112 = vmatpush1.bf16.msra.mxu1 %v1291_v10  ;;  %919 = vmatprep.mubr.f32.mxu1 %v1233_v1  ;;  %v138_v10 = vadd.f32 %v1347_v38, %v110_v51 }
 0x977   :  { %1114 = vmatprep.subr.bf16.mxu1 %v1293_v11  ;;  %v139_v11 = vadd.f32 %v1350_v40, %v111_v52 }
 0x97a   :  { %1116 = vmatpush1.bf16.msra.mxu1 %v1298_v16 }
 0x97b   :  { %1118 = vmatprep.subr.bf16.mxu1 %v1302_v17 }
 0x97e   :  { %1120 = vmatpush1.bf16.msra.mxu1 %v1309_v23 }
 0x97f   :  { %1122 = vmatprep.subr.bf16.mxu1 %v1313_v24 }
 0x982   :  { %1124 = vmatpush1.bf16.msra.mxu1 %v1317_v27 }
 0xa48   :  { %v729_v1 = vpop.f32.mrb[4].mxu1 }
 0xa49   :  { %v734_v53 = vadd.f32 %v729_v1, %v138_v10  ;;  %v731_v16 = vpop.f32.mrb[5].mxu1 }
 0xa4a   :  { %v735_v17 = vadd.f32 %v731_v16, %v139_v11 }
 0xa4b   :  { %1164 = vtanh.f32 %v734_v53 }
 0xa4c   :  { %1166 = vtanh.f32 %v735_v17  ;;  %v996_v17 = vld [vmem:[#allocation3] ss:$0 sm:$0xff] }
 0xa55   :  { %v1165_v23 = vpop.eup %1164 }
 0xa56   :  { %v738_v54 = vmul.f32 0.5, %v1165_v23  ;;  %v1167_v55 = vpop.eup %1166 }
 0xa57   :  { %v740_v60 = vmul.f32 0.5, %v1167_v55 }
 0xa58   :  { %v739_v24 = vadd.f32 0.5, %v738_v54 }
 0xa59   :  { %v741_v61 = vadd.f32 0.5, %v740_v60 }
 0xa5a   :  { %v743_v27 = vmul.f32 %v1167_v55, %v739_v24  ;;  %v742_v57 = vmul.f32 %v739_v24, %v652_v44 }
 0xa5c   :  { %745 = vrot.lane.b32.xlu0 %v743_v27, %s1235_s1 }
 0xa60   :  { %81 = vperm.xlu0 %1132, %v46_v56  }
 0xace   :  { %v746_v58 = vpop.permute.xlu0 %745 }
 0xacf   :  { %v748_v59 = vadd.f32 %v746_v58, %v742_v57 }
 0xad1   :  { %1168 = vtanh.f32 %v748_v59 }
 0xadb   :  { %v1169_v62 = vpop.eup %1168 }
 0xadc   :  { %v750_v63 = vmul.f32 %v1169_v62, %v741_v61 }
 0xade   :  { %755 = vrot.lane.b32.xlu1 %v750_v63, %s1235_s1 }
 0xadf   :  { %v82_v2 = vpop.permute.xlu0 %81 }
 0xae0   :  { %v112_v3 = vmul.f32 %v1339_v33, %v82_v2  ;;  %v113_v4 = vmul.f32 %v1344_v36, %v82_v2 }
 0xae2   :  { %v140_v5 = vadd.f32 %v1347_v38, %v112_v3  ;;  %v141_v8 = vadd.f32 %v1350_v40, %v113_v4 }
 0xb50   :  { %v756_v0 = vpop.permute.xlu1 %755 }
 0xb51   :  { %993 = vmatmul.mubr.msk.f32.vlgmr.msra.gmra.mrb[6].mxu0 %vm179_vm0, %v756_v0 }
 0xc24   :  { %v825_v6 = vpop.f32.mrb[6].mxu0 }
 0xc25   :  { %v830_v7 = vadd.f32 %v825_v6, %v140_v5  ;;  %v827_v9 = vpop.f32.mrb[7].mxu0 }
 0xc26   :  { %v831_v12 = vadd.f32 %v827_v9, %v141_v8 }
 0xc27   :  { %1170 = vtanh.f32 %v830_v7 }
 0xc28   :  { %1172 = vtanh.f32 %v831_v12 }
 0xc31   :  { %v1171_v13 = vpop.eup %1170 }
 0xc32   :  { %v834_v14 = vmul.f32 0.5, %v1171_v13  ;;  %v1173_v18 = vpop.eup %1172 }
 0xc33   :  { %v836_v26 = vmul.f32 0.5, %v1173_v18 }
 0xc34   :  { %v835_v15 = vadd.f32 0.5, %v834_v14 }
 0xc35   :  { %v837_v28 = vadd.f32 0.5, %v836_v26 }
 0xc36   :  { %v839_v19 = vmul.f32 %v1173_v18, %v835_v15  ;;  %v838_v21 = vmul.f32 %v835_v15, %v748_v59 }
 0xc38   :  { %841 = vrot.lane.b32.xlu1 %v839_v19, %s1235_s1 }
 0xc3c   :  { %86 = vperm.xlu1 %1133, %v47_v20  }
 0xc40   :  { %948 = vrot.lane.b32.xlu1 %v995_v32, %s1235_s1 }
 0xcaa   :  { %v842_v22 = vpop.permute.xlu1 %841 }
 0xcab   :  { %v844_v25 = vadd.f32 %v842_v22, %v838_v21 }
 0xcad   :  { %1174 = vtanh.f32 %v844_v25 }
 0xcb7   :  { %v1175_v29 = vpop.eup %1174 }
 0xcb8   :  { %v846_v30 = vmul.f32 %v1175_v29, %v837_v28 }
 0xcba   :  { %851 = vrot.lane.b32.xlu0 %v846_v30, %s1235_s1 }
 0xcbb   :  { %v87_v34 = vpop.permute.xlu1 %86 }
 0xcbc   :  { %v114_v35 = vmul.f32 %v1339_v33, %v87_v34  ;;  %v115_v37 = vmul.f32 %v1344_v36, %v87_v34 }
 0xcbe   :  { %v142_v39 = vadd.f32 %v1347_v38, %v114_v35  ;;  %v143_v43 = vadd.f32 %v1350_v40, %v115_v37 }
 0xcbf   :  { %v949_v1 = vpop.permute.xlu1 %948 }
 0xd2c   :  { %v852_v31 = vpop.permute.xlu0 %851 }
 0xd2d   :  { %994 = vmatmul.mubr.msk.f32.vlgmr.msra.gmra.mrb[6].mxu1 %vm179_vm0, %v852_v31 }
 0xe00   :  { %v921_v41 = vpop.f32.mrb[6].mxu1 }
 0xe01   :  { %v926_v42 = vadd.f32 %v921_v41, %v142_v39  ;;  %v923_v44 = vpop.f32.mrb[7].mxu1 }
 0xe02   :  { %v927_v45 = vadd.f32 %v923_v44, %v143_v43 }
 0xe03   :  { %1176 = vtanh.f32 %v926_v42 }
 0xe04   :  { %1178 = vtanh.f32 %v927_v45 }
 0xe0d   :  { %v1177_v46 = vpop.eup %1176 }
 0xe0e   :  { %v930_v47 = vmul.f32 0.5, %v1177_v46  ;;  %v1179_v49 = vpop.eup %1178 }
 0xe0f   :  { %v932_v38 = vmul.f32 0.5, %v1179_v49 }
 0xe10   :  { %v931_v48 = vadd.f32 0.5, %v930_v47 }
 0xe11   :  { %v933_v52 = vadd.f32 0.5, %v932_v38 }
 0xe12   :  { %v935_v50 = vmul.f32 %v1179_v49, %v931_v48  ;;  %v934_v33 = vmul.f32 %v931_v48, %v844_v25 }
 0xe14   :  { %937 = vrot.lane.b32.xlu0 %v935_v50, %s1235_s1 }
 0xe86   :  { %v938_v51 = vpop.permute.xlu0 %937 }
 0xe87   :  { %v940_v36 = vadd.f32 %v938_v51, %v934_v33 }
 0xe89   :  { %1180 = vtanh.f32 %v940_v36 }
 0xe93   :  { %v1181_v10 = vpop.eup %1180 }
 0xe94   :  { %v942_v40 = vmul.f32 %v1181_v10, %v933_v52 }
 0xe96   :  { %v951_v53 = vmul.f32 %v949_v1, %v942_v40 }
 0xe98   :  { %953 = vrot.lane.b32.xlu0 %v951_v53, %s1235_s1 }
 0xf0a   :  { %v954_v11 = vpop.permute.xlu0 %953 }
 0xf0b   :  { %v956_v16 = vsel %vm179_vm0, %v954_v11, 0.0 }
 0xf0c   :  { %957 = vadd.xlane.f32.xlu1 %v956_v16 }
 0xf99   :  { %v958_v23 = vpop.xlane.xlu1 %957 }
 0xf9a   :  { %v966_v54 = vadd.f32 %v996_v17, %v958_v23 }
 0xf9c   :  { %969 = vperm.xlu0 %1132, %v966_v54  }
0x101b   :  { %v970_v24 = vpop.permute.xlu0 %969 }
0x101c   :  { %972 = vst [vmem:[#allocation7] sm:$0xff] %v970_v24 }
0x101d   :  { %1215 = shalt.err (!%p1212_p12)
}
0x101e   :  { %s1216_s10 = scalar_lea.hbm %s1492_s6, 128 }
0x101f   :  { %p1217_p13 = scmp.ne.s32.totalorder %s1492_s6, %s1216_s10  ;;  %p1220_p0 = scmp.lt.u32.totalorder %s1216_s10, %s1492_s6 }
0x1021   :  { %p1222_p1 = pnand %p1220_p0, %p1217_p13 }
0x1023   :  { %1225 = shalt.err (!%p1222_p1)
}
0x1024   :  { %982 = dma.vmem_to_hbm [thread:$0]  %s980_s4, 128, %s1492_s6, [#allocation6]  }
0x1025   :  { %1228 = dma.done.wait [#allocation6], 128  }
0x1026   :  { %1229 = vsyncadd [#allocation6], 4294967168 }
0x1027   :  { %986 = vsyncpa [#allocation5], 1 }
0x1028   :  { %987 = vsyncpa [#allocation6], 1 }

</bundles_post_ra>
